<compile_context>
chip_gen: v6e
topology: v6e:2x2x1
jax: 0.10.0
libtpu: 0.0.40
codegen_flags: <defaults>
</compile_context>

<pallas_src>
import functools

import jax
import jax.numpy as jnp
from jax.experimental import pallas as pl
from jax.experimental.pallas import tpu as pltpu


def _shortcut_kernel(x_ref, o_ref, *, chan_pad, h_out, w_out, strided_rows):
    # x_ref: (TN, C, H, W)  whole images (contiguous HBM block)
    # o_ref: (TN, C + 2*chan_pad, H_out, W_out)
    tn, c, h_in, w_in = x_ref.shape
    dtype = o_ref.dtype

    # 0/1 column-selection matrix: selw[w, k] = (w == 2k).  A few vregs of iota +
    # compare per step -- negligible VPU work, keeps the kernel single-input.
    wi = jax.lax.broadcasted_iota(jnp.int32, (w_in, w_out), 0)
    wk = jax.lax.broadcasted_iota(jnp.int32, (w_in, w_out), 1)
    selw = (wi == 2 * wk).astype(x_ref.dtype)

    if strided_rows:
        # Even rows via native sublane-strided load, then even columns on the MXU.
        xe = x_ref[:, :, pl.ds(0, h_out, stride=2), :]          # (TN, C, H_out, W)
        y = jnp.dot(xe.reshape(tn * c * h_out, w_in), selw,
                    preferred_element_type=jnp.float32)
        y = y.reshape(tn, c, h_out, w_out)
    else:
        # Fallback (no strided loads): rows are also dropped with a 0/1 selection
        # matmul, bracketed by two minor-dim (XLU) transposes.  All ops here are
        # plain dots / minor transposes / major reshapes.
        hi = jax.lax.broadcasted_iota(jnp.int32, (h_in, h_out), 0)
        hj = jax.lax.broadcasted_iota(jnp.int32, (h_in, h_out), 1)
        selh = (hi == 2 * hj).astype(jnp.float32)
        yc = jnp.dot(x_ref[...].reshape(tn * c * h_in, w_in), selw,
                     preferred_element_type=jnp.float32)
        yc = yc.reshape(tn, c, h_in, w_out)
        yt = jnp.swapaxes(yc, 2, 3)                              # (TN, C, W_out, H)
        yr = jnp.dot(yt.reshape(tn * c * w_out, h_in), selh,
                     preferred_element_type=jnp.float32)
        y = jnp.swapaxes(yr.reshape(tn, c, w_out, h_out), 2, 3)  # (TN, C, H_out, W_out)

    y = y.astype(dtype)
    if chan_pad > 0:
        z = jnp.zeros((tn, chan_pad, h_out, w_out), dtype=dtype)
        y = jnp.concatenate([z, y, z], axis=1)                   # pad on a major axis
    o_ref[...] = y                                               # one full-block store


def lambda_layer_shortcut(x, planes):
    """Forward of LambdaLayer(option-A shortcut) on a native NCHW tensor.

    x: (N, C, H, W).  Returns (N, C + 2*(planes//4), ceil(H/2), ceil(W/2)).
    """
    n, c, h, w = x.shape
    pad = planes // 4
    c_out = c + 2 * pad
    h_out = (h + 1) // 2
    w_out = (w + 1) // 2
    itemsize = jnp.dtype(x.dtype).itemsize

    # --- block sizing: whole images per step.  Budget uses the *lane-padded*
    # VMEM footprint (last dim pads to 128, second-to-last to 8) and keeps the
    # double-buffered in+out blocks <= ~12 MiB, while aiming for >= 8 grid steps
    # so prefetch/writeback overlap and v7x's two cores both get work.
    def _rup(v, m):
        return -(-v // m) * m

    img_vmem = (c * _rup(h, 8) * _rup(w, 128) +
                c_out * _rup(h_out, 8) * _rup(w_out, 128)) * itemsize
    budget = 12 * 1024 * 1024
    cap = max(1, min(n, budget // (2 * img_vmem), max(1, n // 8)))
    tn = next(t for t in range(cap, 0, -1) if n % t == 0)   # largest divisor of N
    grid = (n // tn,)

    bytes_accessed = (n * c * h * w + n * c_out * h_out * w_out) * itemsize
    flops = 2 * n * c * h_out * w * w_out   # column-selection matmul

    def build(strided_rows):
        kern = functools.partial(_shortcut_kernel, chan_pad=pad, h_out=h_out,
                                 w_out=w_out, strided_rows=strided_rows)
        return pl.pallas_call(
            kern,
            out_shape=jax.ShapeDtypeStruct((n, c_out, h_out, w_out), x.dtype),
            grid=grid,
            in_specs=[pl.BlockSpec((tn, c, h, w), lambda i: (i, 0, 0, 0))],
            out_specs=pl.BlockSpec((tn, c_out, h_out, w_out),
                                   lambda i: (i, 0, 0, 0)),
            compiler_params=pltpu.CompilerParams(
                dimension_semantics=("parallel",),
                vmem_limit_bytes=32 * 1024 * 1024),
            cost_estimate=pl.CostEstimate(flops=flops, transcendentals=0,
                                          bytes_accessed=bytes_accessed),
        )

    try:
        return build(strided_rows=True)(x)
    except Exception:
        # TODO(synk): drop once sublane-strided ref loads are guaranteed by the
        # installed Mosaic; the fallback only adds a small row-selection matmul.
        return build(strided_rows=False)(x)


if __name__ == "__main__":
    key = jax.random.PRNGKey(0)
    x = jax.random.normal(key, (2, 4, 16, 16), dtype=jnp.float32)
    planes = 8  # -> channel pad of planes//4 = 2 per side, C_out = 8

    y = jax.block_until_ready(lambda_layer_shortcut(x, planes))

    # pure-JAX reference of the wrapped lambda (F.pad over the channel dim)
    ref = jnp.pad(x[:, :, ::2, ::2], ((0, 0), (2, 2), (0, 0), (0, 0)))
    assert y.shape == (2, 8, 8, 8), y.shape
    assert y.dtype == x.dtype
    assert jnp.allclose(y, ref), "mismatch vs. pure-JAX reference"

    # second shape: multi-step grid (8 steps), aligned channel pad of 8
    x2 = jax.random.normal(jax.random.PRNGKey(1), (8, 16, 32, 32),
                           dtype=jnp.float32)
    y2 = jax.block_until_ready(lambda_layer_shortcut(x2, 32))
    ref2 = jnp.pad(x2[:, :, ::2, ::2], ((0, 0), (8, 8), (0, 0), (0, 0)))
    assert y2.shape == (8, 32, 16, 16), y2.shape
    assert jnp.allclose(y2, ref2), "mismatch vs. pure-JAX reference (case 2)"

    print("KERNEL_OK")
</pallas_src>

<mosaic_0001>
module attributes {stable_mosaic.version = 11 : i64} {
  func.func @_shortcut_kernel(%arg0: i32, %arg1: memref<1x4x16x16xf32, #tpu.memory_space<vmem>>, %arg2: memref<1x8x8x8xf32, #tpu.memory_space<vmem>>) attributes {dimension_semantics = [#tpu.dimension_semantics<parallel>], iteration_bounds = array<i64: 2>, scalar_prefetch = 0 : i64, scratch_operands = 0 : i64, tpu.core_type = #tpu.core_type<tc>, window_params = [{transform_indices = @transform_0, window_bounds = array<i64: 1, 4, 16, 16>}, {transform_indices = @transform_1, window_bounds = array<i64: 1, 8, 8, 8>}]} {
    %0 = tpu.iota {dimensions = array<i32: 0>} : vector<16x8xi32>
    %1 = tpu.iota {dimensions = array<i32: 1>} : vector<16x8xi32>
    %c2_i32 = arith.constant 2 : i32
    %2 = vector.broadcast %c2_i32 : i32 to vector<16x8xi32>
    %3 = arith.muli %2, %1 : vector<16x8xi32>
    %4 = arith.cmpi eq, %0, %3 : vector<16x8xi32>
    %5 = arith.extui %4 : vector<16x8xi1> to vector<16x8xi32>
    %6 = arith.sitofp %5 : vector<16x8xi32> to vector<16x8xf32>
    %c0 = arith.constant 0 : index
    %c0_0 = arith.constant 0 : index
    %c0_1 = arith.constant 0 : index
    %c0_2 = arith.constant 0 : index
    %7 = tpu.strided_load %arg1[%c0, %c0_0, %c0_1, %c0_2] {strides = array<i32: 1, 1, 2, 1>} : memref<1x4x16x16xf32, #tpu.memory_space<vmem>>, vector<1x4x8x16xf32>
    %8 = vector.shape_cast %7 : vector<1x4x8x16xf32> to vector<32x16xf32>
    %cst = arith.constant dense<0.000000e+00> : vector<32x8xf32>
    %9 = tpu.matmul %8, %6, %cst {dimension_numbers = #tpu.dot_dimension_numbers<[1], [0], [0], [1], [0, 0, 1, 1], [], []>} : vector<32x16xf32>, vector<16x8xf32>, vector<32x8xf32> -> vector<32x8xf32>
    %10 = vector.shape_cast %9 : vector<32x8xf32> to vector<1x4x8x8xf32>
    %cst_3 = arith.constant 0.000000e+00 : f32
    %11 = vector.broadcast %cst_3 : f32 to vector<1x2x8x8xf32>
    %12 = tpu.concatenate %11, %10, %11 in 1 : vector<1x2x8x8xf32>, vector<1x4x8x8xf32>, vector<1x2x8x8xf32> -> vector<1x8x8x8xf32>
    %c0_4 = arith.constant 0 : index
    %c0_5 = arith.constant 0 : index
    %c0_6 = arith.constant 0 : index
    %c0_7 = arith.constant 0 : index
    %13 = vector.load %arg2[%c0_4, %c0_5, %c0_6, %c0_7] : memref<1x8x8x8xf32, #tpu.memory_space<vmem>>, vector<1x8x8x8xf32>
    tpu.vector_store %arg2[%c0_4, %c0_5, %c0_6, %c0_7], %12 {strides = array<i32>} : memref<1x8x8x8xf32, #tpu.memory_space<vmem>>, vector<1x8x8x8xf32>,
    return
  }
  func.func @transform_0(%arg0: i32) -> (i32, i32, i32, i32) {
    %c0_i32 = arith.constant 0 : i32
    %c0_i32_0 = arith.constant 0 : i32
    %c0_i32_1 = arith.constant 0 : i32
    %c0_i32_2 = arith.constant 0 : i32
    return %arg0, %c0_i32, %c0_i32_0, %c0_i32_1 : i32, i32, i32, i32
  }
  func.func @transform_1(%arg0: i32) -> (i32, i32, i32, i32) {
    %c0_i32 = arith.constant 0 : i32
    %c0_i32_0 = arith.constant 0 : i32
    %c0_i32_1 = arith.constant 0 : i32
    %c0_i32_2 = arith.constant 0 : i32
    return %arg0, %c0_i32, %c0_i32_0, %c0_i32_1 : i32, i32, i32, i32
  }
}

module attributes {stable_mosaic.version = 11 : i64} {
  func.func @_shortcut_kernel(%arg0: i32, %arg1: memref<1x4x16x16xf32, #tpu.memory_space<vmem>>, %arg2: memref<1x8x8x8xf32, #tpu.memory_space<vmem>>) attributes {dimension_semantics = [#tpu.dimension_semantics<parallel>], iteration_bounds = array<i64: 2>, scalar_prefetch = 0 : i64, scratch_operands = 0 : i64, tpu.core_type = #tpu.core_type<tc>, window_params = [{transform_indices = @transform_0, window_bounds = array<i64: 1, 4, 16, 16>}, {transform_indices = @transform_1, window_bounds = array<i64: 1, 8, 8, 8>}]} {
    %0 = tpu.iota {dimensions = array<i32: 0>} : vector<16x8xi32>
    %1 = tpu.iota {dimensions = array<i32: 1>} : vector<16x8xi32>
    %c2_i32 = arith.constant 2 : i32
    %2 = vector.broadcast %c2_i32 : i32 to vector<16x8xi32>
    %3 = arith.muli %2, %1 : vector<16x8xi32>
    %4 = arith.cmpi eq, %0, %3 : vector<16x8xi32>
    %5 = arith.extui %4 : vector<16x8xi1> to vector<16x8xi32>
    %6 = arith.sitofp %5 : vector<16x8xi32> to vector<16x8xf32>
    %7 = tpu.iota {dimensions = array<i32: 0>} : vector<16x8xi32>
    %8 = tpu.iota {dimensions = array<i32: 1>} : vector<16x8xi32>
    %c2_i32_0 = arith.constant 2 : i32
    %9 = vector.broadcast %c2_i32_0 : i32 to vector<16x8xi32>
    %10 = arith.muli %9, %8 : vector<16x8xi32>
    %11 = arith.cmpi eq, %7, %10 : vector<16x8xi32>
    %12 = arith.extui %11 : vector<16x8xi1> to vector<16x8xi32>
    %13 = arith.sitofp %12 : vector<16x8xi32> to vector<16x8xf32>
    %c0 = arith.constant 0 : index
    %c0_1 = arith.constant 0 : index
    %c0_2 = arith.constant 0 : index
    %c0_3 = arith.constant 0 : index
    %14 = vector.load %arg1[%c0, %c0_1, %c0_2, %c0_3] : memref<1x4x16x16xf32, #tpu.memory_space<vmem>>, vector<1x4x16x16xf32>
    %15 = vector.shape_cast %14 : vector<1x4x16x16xf32> to vector<64x16xf32>
    %cst = arith.constant dense<0.000000e+00> : vector<64x8xf32>
    %16 = tpu.matmul %15, %6, %cst {dimension_numbers = #tpu.dot_dimension_numbers<[1], [0], [0], [1], [0, 0, 1, 1], [], []>} : vector<64x16xf32>, vector<16x8xf32>, vector<64x8xf32> -> vector<64x8xf32>
    %17 = vector.shape_cast %16 : vector<64x8xf32> to vector<1x4x16x8xf32>
    %18 = tpu.transpose %17, [0, 1, 3, 2] : vector<1x4x16x8xf32> -> vector<1x4x8x16xf32>
    %19 = vector.shape_cast %18 : vector<1x4x8x16xf32> to vector<32x16xf32>
    %cst_4 = arith.constant dense<0.000000e+00> : vector<32x8xf32>
    %20 = tpu.matmul %19, %13, %cst_4 {dimension_numbers = #tpu.dot_dimension_numbers<[1], [0], [0], [1], [0, 0, 1, 1], [], []>} : vector<32x16xf32>, vector<16x8xf32>, vector<32x8xf32> -> vector<32x8xf32>
    %21 = vector.shape_cast %20 : vector<32x8xf32> to vector<1x4x8x8xf32>
    %22 = tpu.transpose %21, [0, 1, 3, 2] : vector<1x4x8x8xf32> -> vector<1x4x8x8xf32>
    %cst_5 = arith.constant 0.000000e+00 : f32
    %23 = vector.broadcast %cst_5 : f32 to vector<1x2x8x8xf32>
    %24 = tpu.concatenate %23, %22, %23 in 1 : vector<1x2x8x8xf32>, vector<1x4x8x8xf32>, vector<1x2x8x8xf32> -> vector<1x8x8x8xf32>
    %c0_6 = arith.constant 0 : index
    %c0_7 = arith.constant 0 : index
    %c0_8 = arith.constant 0 : index
    %c0_9 = arith.constant 0 : index
    %25 = vector.load %arg2[%c0_6, %c0_7, %c0_8, %c0_9] : memref<1x8x8x8xf32, #tpu.memory_space<vmem>>, vector<1x8x8x8xf32>
    tpu.vector_store %arg2[%c0_6, %c0_7, %c0_8, %c0_9], %24 {strides = array<i32>} : memref<1x8x8x8xf32, #tpu.memory_space<vmem>>, vector<1x8x8x8xf32>,
    return
  }
  func.func @transform_0(%arg0: i32) -> (i32, i32, i32, i32) {
    %c0_i32 = arith.constant 0 : i32
    %c0_i32_0 = arith.constant 0 : i32
    %c0_i32_1 = arith.constant 0 : i32
    %c0_i32_2 = arith.constant 0 : i32
    return %arg0, %c0_i32, %c0_i32_0, %c0_i32_1 : i32, i32, i32, i32
  }
  func.func @transform_1(%arg0: i32) -> (i32, i32, i32, i32) {
    %c0_i32 = arith.constant 0 : i32
    %c0_i32_0 = arith.constant 0 : i32
    %c0_i32_1 = arith.constant 0 : i32
    %c0_i32_2 = arith.constant 0 : i32
    return %arg0, %c0_i32, %c0_i32_0, %c0_i32_1 : i32, i32, i32, i32
  }
}

</mosaic_0001>

<bundles_post_ra>
// kernel: tpu_custom_call.1
= control target key start
LH: loop header
LB: loop body
LE: loop exit
PB: predicated region body
PF: predicated region fallthrough
CT: control target
= control target key end

     0   :  { %6 = vsyncpa [#allocation3], 0  ;;  %s725_s0 = inlined_call_operand.hbm [shape: f32[2,4,16,16], index: 0, kind: input, shape index: {}]   ;;  %s726_s1 = inlined_call_operand.hbm [shape: f32[2,8,8,8], index: 1, kind: output, shape index: {}]  }
   0x1   :  { %8 = vsyncpa [#allocation3 + $0x1], 0 }
   0x2   :  { %9 = vsyncpa [#allocation4], 0 }
   0x3   :  { %11 = vsyncpa [#allocation4 + $0x1], 0  ;;  %s559_s6 = smov 0   ;;  %s561_s7 = smov 0  }
   0x4   :  { %s563_s8 = smov 0   ;;  %s565_s9 = smov 0  }
   0x5 LB: > { %s580_s10 = sadd.s32 4294967295, %s539_s9   ;;  %s348_s11 = sadd.s32 4294967294, %s539_s9   ;;  %s539_s9 = sphi %s565_s9, %s741_s9   ;;  %s535_s8 = sphi %s563_s8, %s740_s8   ;;  %s531_s7 = sphi %s561_s7, %s739_s7   ;;  %s527_s6 = sphi %s559_s6, %s738_s6  }
   0x6   : > { %s584_s12 = sadd.s32 1, %s539_s9   ;;  %s24_s13 = sadd.s32 1, %s535_s8 }
   0x7   : > { %s21_s14 = ssub.s32 %s539_s9, %s584_s12  ;;  %p31_p0 = scmp.ne.s32.totalorder %s535_s8, %s531_s7 }
   0x8   : > { %p22_p1 = scmp.eq.s32.totalorder %s21_s14, 0  ;;  %p32_p2 = scmp.eq.s32.totalorder %s539_s9, 0 }
   0x9   : > { %p37_p3 = scmp.ne.s32.totalorder %s531_s7, %s527_s6  ;;  %p38_p4 = scmp.eq.s32.totalorder %s580_s10, 0 }
   0xa   : > { %s596_s15 = scalar_select %p22_p1, %s535_s8, %s24_s13  }
   0xb   : > { %p598_p5 = por %p32_p2, %p31_p0  ;;  %p602_p6 = por %p38_p4, %p37_p3 }
   0xc   : > { %p61_p7 = scmp.eq.s32.totalorder %s580_s10, 1  ;;  %p67_p8 = scmp.eq.s32.totalorder %s348_s11, 1 }
   0xd   : > { %s730_s17 = scalar_select %p602_p6, 1, 0 }
   0xe   : > { %p407_p10 = scmp.lt.s32.totalorder %s539_s9, 2  ;;  %p609_p11 = por %p61_p7, %p31_p0 }
   0xf   : > { %p613_p12 = por %p67_p8, %p37_p3  ;;  %s87_s20 = sand.u32 1, %s535_s8  }
  0x10   : > { %s731_s18 = scalar_select %p609_p11, 1, 0 }
  0x11   : > { %s732_s19 = scalar_select %p613_p12, 1, 0 }
  0x12   : > { %s373_s21 = sshll.u32 %s539_s9, 10  ;;  %s351_s22 = sshll.u32 %s87_s20, 6 }
  0x13   : > { %s622_s25 = scalar_lea.hbm %s725_s0, %s373_s21  ;;  %s91_s26 = scalar_lea.vmem [#allocation2], %s351_s22 }
  0x14   : > { %s98_s27 = sshll.u32 %s91_s26, 4  ;;  %p626_p13 = pnand %p407_p10, %p598_p5  ;;  %s630_s27 = int_to_ptr.vmem [resolvable:$true] %s98_s27 }
  0x15   : > { %s632_s29 = scalar_lea.sflag [#allocation3], %s87_s20  ;;  %s447_s30 = scalar_lea.hbm %s622_s25, 1024 }
  0x16   : > { %p448_p0 = scmp.ne.s32.totalorder %s622_s25, %s447_s30  ;;  %p449_p1 = pneg %p626_p13 }
  0x17   : > { %s452_s4 = scalar_lea.hbm %s725_s0, 2048  ;;  %p453_p4 = scmp.lt.s32.totalorder %s622_s25, %s725_s0 }
  0x18   : > { %p450_p2 = pnand %p449_p1, %p448_p0  ;;  %p454_p5 = scmp.lt.s32.totalorder %s452_s4, %s447_s30 }
  0x1a   : > { %p451_p3 = pneg %p450_p2  ;;  %p455_p7 = por %p454_p5, %p453_p4 }
  0x1c   : > { %p456_p8 = pnand %p455_p7, %p451_p3 }
  0x1e   : > { %459 = shalt.err (!%p456_p8)
}
  0x1f   : > { %s460_s13 = scalar_lea.vmem %s630_s27, 1024  ;;  %s541_s14 = smov [#allocation2]  }
  0x20   : > { %p461_p10 = scmp.ne.s32.totalorder %s630_s27, %s460_s13  ;;  %s465_s16 = sshll.u32 %s541_s14, 4  ;;  %s466_s16 = int_to_ptr.vmem [resolvable:$false] %s465_s16 }
  0x21   : > { %s467_s20 = scalar_lea.vmem %s466_s16, 2048  ;;  %p468_p2 = scmp.lt.s32.totalorder %s630_s27, %s466_s16 }
  0x22   : > { %p463_p9 = pnand %p461_p10, %p449_p1  ;;  %p469_p12 = scmp.lt.s32.totalorder %s467_s20, %s460_s13 }
  0x24   : > { %p464_p0 = pneg %p463_p9  ;;  %p470_p11 = por %p469_p12, %p468_p2 }
  0x26   : > { %p471_p6 = pnand %p470_p11, %p464_p0 }
  0x28   : > { %474 = shalt.err (!%p471_p6)
}
  0x29   : > { %s542_s21 = smov 128   ;;  %s543_s22 = smov 8  }
  0x2a   : > { %402 = dma.hbm_to_vmem [thread:$0]  (!%p626_p13), %s622_s25, 1024, %s630_s27, %s632_s29, %s542_s21, %s542_s21, %s543_s22  }
  0x2b   : > { %p354_p9 = scmp.ge.s32.totalorder %s539_s9, 1  ;;  %p106_p1 = scmp.lt.s32.totalorder %s539_s9, 3 }
  0x2d   : > { %p107_p3 = pnand %p354_p9, %p106_p1 }
  0x2e   : > { %s656_s23 = sand.u32 (!%p107_p3), 1, %s531_s7   ;;  %p734_p6 = scmp.ne.s32.totalorder (!%p107_p3), %s730_s17, 0 }
  0x2f   : > { %110 = sbr.rel (%p107_p3) target bundleno = 273 (0x111), region = 24  ;;  %s355_s24 = sshll.u32 (!%p107_p3), %s656_s23, 6 }
  0x30   : > { %s113_s26 = scalar_lea.sflag (!%p107_p3), [#allocation3], %s656_s23  ;;  %s116_s30 = scalar_lea.vmem (!%p107_p3), [#allocation2], %s355_s24 }
  0x34   : > { %518 = dma.done.wait (%p734_p6), %s113_s26, 1024  }
  0x35   : > { %520 = vsyncadd (%p734_p6), %s113_s26, 4294966272  ;;  %v135_v0 = vlaneseq  ;;  %v544_v5 = vmov 1.0   ;;  %v147_v6 = vld [vmem:[%s116_s30] ss:$2 sm:$0xff]  ;;  %vm154_vm2 = vcmask 130048   ;;  %vm252_vm3 = vcmask 64512  }
  0x36   : > { %v360_v7 = vld [vmem:[%s116_s30 + $0x20] ss:$2 sm:$0xff]  ;;  %v359_v8 = vld [vmem:[%s116_s30 + $0x10] ss:$2 sm:$0xff]  ;;  %385 = vmatprep.mubr.msk.f32.mxu0 %vm154_vm2, %v147_v6  ;;  %s134_s17 = scalar_lea.vmem [#allocation5], %s355_s24  ;;  %v545_v10 = vmov 0.0  }
  0x37   : > { %v136_v1 = vshrl.u32 %v135_v0, 7  ;;  %v139_v2 = vand.u32 127, %v135_v0  ;;  %v361_v9 = vld [vmem:[%s116_s30 + $0x30] ss:$2 sm:$0xff]  ;;  %388 = vmatprep.mubr.msk.f32.mxu1 %vm154_vm2, %v360_v7  ;;  %253 = vst.msk [vmem:[%s134_s17] sm:$0xff] %vm252_vm3, %v545_v10  ;;  %254 = vst.msk [vmem:[%s134_s17 + $0x8] sm:$0xff] %vm252_vm3, %v545_v10 }
  0x38   : > { %259 = vst.msk [vmem:[%s134_s17 + $0x30] sm:$0xff] %vm252_vm3, %v545_v10  ;;  %260 = vst.msk [vmem:[%s134_s17 + $0x38] sm:$0xff] %vm252_vm3, %v545_v10  ;;  %s275_s25 = sshll.u32 %s134_s17, 4  ;;  %s374_s27 = sshll.u32 %s580_s10, 10  ;;  %s673_s25 = int_to_ptr.vmem [resolvable:$true] %s275_s25 }
  0x39   : > { %v137_v3 = vadd.s32 8, %v136_v1  ;;  %v140_v4 = vmul.u32 2, %v139_v2  ;;  %s678_s2 = scalar_lea.hbm %s726_s1, %s374_s27  ;;  %s262_s10 = scalar_lea.sflag [#allocation4], %s656_s23 }
  0x3a   : > { %s475_s3 = scalar_lea.vmem %s673_s25, 1024  ;;  %p735_p12 = scmp.ne.s32.totalorder %s731_s18, 0 }
  0x3b   : > { %vm142_vm0 = vcmp.eq.s32.totalorder %v137_v3, %v140_v4  ;;  %vm141_vm1 = vcmp.eq.s32.totalorder %v136_v1, %v140_v4  ;;  %p476_p11 = scmp.ne.s32.totalorder %s673_s25, %s475_s3  ;;  %s546_s4 = smov [#allocation5]  }
  0x3c   : > { %381 = vmatprep.subr.msk.mxu0 %vm142_vm0, %v544_v5  ;;  %391 = vmatprep.subr.msk.mxu1 %vm142_vm0, %v544_v5  ;;  %s479_s5 = sshll.u32 %s546_s4, 4  ;;  %s480_s5 = int_to_ptr.vmem [resolvable:$false] %s479_s5 }
  0x3d   : > { %382 = vmatpush3.msk.msra.mxu0 %vm142_vm0, %v544_v5  ;;  %393 = vmatpush3.msk.msra.mxu1 %vm142_vm0, %v544_v5  ;;  %p477_p13 = pnand %p476_p11, %p735_p12  ;;  %s481_s11 = scalar_lea.vmem %s480_s5, 2048 }
  0x3e   : > { %383 = vmatprep.subr.msk.mxu0 %vm141_vm1, %v544_v5  ;;  %392 = vmatprep.subr.msk.mxu1 %vm141_vm1, %v544_v5  ;;  %p482_p5 = scmp.lt.s32.totalorder %s673_s25, %s480_s5  ;;  %p483_p7 = scmp.lt.s32.totalorder %s481_s11, %s475_s3 }
  0x3f   : > { %384 = vmatpush3.msk.msra.mxu0 %vm141_vm1, %v544_v5  ;;  %394 = vmatpush3.msk.msra.mxu1 %vm141_vm1, %v544_v5  ;;  %p478_p4 = pneg %p477_p13 }
  0x40   : > { %386 = vmatmul.mubr.msk.f32.vlgmr.msra.gmra.mxu0 %vm154_vm2, %v359_v8  ;;  %389 = vmatmul.mubr.msk.f32.vlgmr.msra.gmra.mxu1 %vm154_vm2, %v361_v9  ;;  %p484_p8 = por %p483_p7, %p482_p5 }
  0x42   : > { %p485_p10 = pnand %p484_p8, %p478_p4 }
 0x100   : > { %v387_v11 = vpop.f32.mrf.mxu0  ;;  %v390_v12 = vpop.f32.mrf.mxu1 }
 0x101   : > { %256 = vst.msk [vmem:[%s134_s17 + $0x18] sm:$0xff] %vm252_vm3, %v387_v11  ;;  %258 = vst.msk [vmem:[%s134_s17 + $0x28] sm:$0xff] %vm252_vm3, %v390_v12 }
 0x102   : > { %v233_v13 = vpop.f32.mrf.mxu0  ;;  %v243_v14 = vpop.f32.mrf.mxu1 }
 0x103   : > { %255 = vst.msk [vmem:[%s134_s17 + $0x10] sm:$0xff] %vm252_vm3, %v233_v13  ;;  %257 = vst.msk [vmem:[%s134_s17 + $0x20] sm:$0xff] %vm252_vm3, %v243_v14 }
 0x104   : > { %488 = shalt.err (!%p485_p10)
}
 0x105   : > { %s489_s13 = scalar_lea.hbm %s678_s2, 1024  ;;  %s493_s20 = scalar_lea.hbm %s726_s1, 2048 }
 0x106   : > { %p490_p0 = scmp.ne.s32.totalorder %s678_s2, %s489_s13  ;;  %p494_p1 = scmp.lt.s32.totalorder %s678_s2, %s726_s1 }
 0x107   : > { %p495_p3 = scmp.lt.s32.totalorder %s493_s20, %s489_s13 }
 0x108   : > { %p491_p2 = pnand %p490_p0, %p735_p12 }
 0x109   : > { %p496_p6 = por %p495_p3, %p494_p1 }
 0x10a   : > { %p492_p9 = pneg %p491_p2 }
 0x10c   : > { %p497_p11 = pnand %p496_p6, %p492_p9 }
 0x10e   : > { %500 = shalt.err (!%p497_p11)
}
 0x10f   : > { %s547_s24 = smov 128   ;;  %s548_s26 = smov 8  }
 0x110   : > { %397 = dma.vmem_to_hbm [thread:$0]  (%p735_p12), %s673_s25, 1024, %s678_s2, %s262_s10, %s547_s24, %s547_s24, %s548_s26  }
 0x111 PF: > { %s290_s30 = sand.u32 1, %s527_s6   ;;  %p736_p13 = scmp.ne.s32.totalorder %s732_s19, 0 }
 0x112   : > { %p737_p4 = scmp.ge.s32.totalorder %s539_s9, 2  ;;  %s291_s17 = scalar_lea.sflag [#allocation4], %s290_s30 }
 0x114   : > { %p404_p5 = pnand %p737_p4, %p736_p13 }
 0x116   : > { %p405_p7 = pneg %p404_p5 }
 0x118   : > { %522 = dma.done.wait (%p405_p7), %s291_s17, 1024  }
 0x119   : > { %524 = vsyncadd (%p405_p7), %s291_s17, 4294966272  ;;  %p14_p8 = scmp.ge.s32.totalorder %s584_s12, 4   ;;  %s738_s6 = smov %s531_s7 }
 0x11a   : > { %s739_s7 = smov %s535_s8  ;;  %s740_s8 = smov %s596_s15 }
 0x11b   : > { %s741_s9 = smov %s584_s12  ;;  %16 = sbr.rel (!%p14_p8) target bundleno = 5 (0x5), region = 72 }
 0x120   :  { %296 = vsyncpa [#allocation3], 1 }
 0x121   :  { %298 = vsyncpa [#allocation3 + $0x1], 1 }
 0x122   :  { %299 = vsyncpa [#allocation4], 1 }
 0x123   :  { %301 = vsyncpa [#allocation4 + $0x1], 1 }

// kernel: tpu_custom_call.1
= control target key start
LH: loop header
LB: loop body
LE: loop exit
PB: predicated region body
PF: predicated region fallthrough
CT: control target
= control target key end

     0   :  { %6 = vsyncpa [#allocation3], 0  ;;  %s1198_s0 = inlined_call_operand.hbm [shape: f32[2,4,16,16], index: 0, kind: input, shape index: {}]   ;;  %s1199_s1 = inlined_call_operand.hbm [shape: f32[2,8,8,8], index: 1, kind: output, shape index: {}]  }
   0x1   :  { %8 = vsyncpa [#allocation3 + $0x1], 0 }
   0x2   :  { %9 = vsyncpa [#allocation4], 0 }
   0x3   :  { %11 = vsyncpa [#allocation4 + $0x1], 0  ;;  %s978_s6 = smov 0   ;;  %s980_s7 = smov 0  }
   0x4   :  { %s982_s8 = smov 0   ;;  %s984_s9 = smov 0  }
   0x5 LB: > { %s999_s10 = sadd.s32 4294967295, %s958_s9   ;;  %s734_s11 = sadd.s32 4294967294, %s958_s9   ;;  %s958_s9 = sphi %s984_s9, %s1218_s9   ;;  %s954_s8 = sphi %s982_s8, %s1217_s8   ;;  %s950_s7 = sphi %s980_s7, %s1216_s7   ;;  %s946_s6 = sphi %s978_s6, %s1215_s6  }
   0x6   : > { %s1003_s12 = sadd.s32 1, %s958_s9   ;;  %s24_s13 = sadd.s32 1, %s954_s8 }
   0x7   : > { %s21_s14 = ssub.s32 %s958_s9, %s1003_s12  ;;  %p31_p0 = scmp.ne.s32.totalorder %s954_s8, %s950_s7 }
   0x8   : > { %p22_p1 = scmp.eq.s32.totalorder %s21_s14, 0  ;;  %p32_p2 = scmp.eq.s32.totalorder %s958_s9, 0 }
   0x9   : > { %p37_p3 = scmp.ne.s32.totalorder %s950_s7, %s946_s6  ;;  %p38_p4 = scmp.eq.s32.totalorder %s999_s10, 0 }
   0xa   : > { %s1015_s15 = scalar_select %p22_p1, %s954_s8, %s24_s13  }
   0xb   : > { %p1017_p5 = por %p32_p2, %p31_p0  ;;  %p1021_p6 = por %p38_p4, %p37_p3 }
   0xc   : > { %p61_p7 = scmp.eq.s32.totalorder %s999_s10, 1  ;;  %p67_p8 = scmp.eq.s32.totalorder %s734_s11, 1 }
   0xd   : > { %s1203_s17 = scalar_select %p1021_p6, 1, 0 }
   0xe   : > { %p826_p10 = scmp.lt.s32.totalorder %s958_s9, 2  ;;  %p1028_p11 = por %p61_p7, %p31_p0 }
   0xf   : > { %p1032_p12 = por %p67_p8, %p37_p3  ;;  %s87_s20 = sand.u32 1, %s954_s8  }
  0x10   : > { %s1204_s18 = scalar_select %p1028_p11, 1, 0 }
  0x11   : > { %s1205_s19 = scalar_select %p1032_p12, 1, 0 }
  0x12   : > { %s766_s21 = sshll.u32 %s958_s9, 10  ;;  %s737_s22 = sshll.u32 %s87_s20, 6 }
  0x13   : > { %s1041_s25 = scalar_lea.hbm %s1198_s0, %s766_s21  ;;  %s91_s26 = scalar_lea.vmem [#allocation2], %s737_s22 }
  0x14   : > { %s98_s27 = sshll.u32 %s91_s26, 4  ;;  %p1045_p13 = pnand %p826_p10, %p1017_p5  ;;  %s1049_s27 = int_to_ptr.vmem [resolvable:$true] %s98_s27 }
  0x15   : > { %s1051_s29 = scalar_lea.sflag [#allocation3], %s87_s20  ;;  %s866_s30 = scalar_lea.hbm %s1041_s25, 1024 }
  0x16   : > { %p867_p0 = scmp.ne.s32.totalorder %s1041_s25, %s866_s30  ;;  %p868_p1 = pneg %p1045_p13 }
  0x17   : > { %s871_s4 = scalar_lea.hbm %s1198_s0, 2048  ;;  %p872_p4 = scmp.lt.s32.totalorder %s1041_s25, %s1198_s0 }
  0x18   : > { %p869_p2 = pnand %p868_p1, %p867_p0  ;;  %p873_p5 = scmp.lt.s32.totalorder %s871_s4, %s866_s30 }
  0x1a   : > { %p870_p3 = pneg %p869_p2  ;;  %p874_p7 = por %p873_p5, %p872_p4 }
  0x1c   : > { %p875_p8 = pnand %p874_p7, %p870_p3 }
  0x1e   : > { %878 = shalt.err (!%p875_p8)
}
  0x1f   : > { %s879_s13 = scalar_lea.vmem %s1049_s27, 1024  ;;  %s960_s14 = smov [#allocation2]  }
  0x20   : > { %p880_p10 = scmp.ne.s32.totalorder %s1049_s27, %s879_s13  ;;  %s884_s16 = sshll.u32 %s960_s14, 4  ;;  %s885_s16 = int_to_ptr.vmem [resolvable:$false] %s884_s16 }
  0x21   : > { %s886_s20 = scalar_lea.vmem %s885_s16, 2048  ;;  %p887_p2 = scmp.lt.s32.totalorder %s1049_s27, %s885_s16 }
  0x22   : > { %p882_p9 = pnand %p880_p10, %p868_p1  ;;  %p888_p12 = scmp.lt.s32.totalorder %s886_s20, %s879_s13 }
  0x24   : > { %p883_p0 = pneg %p882_p9  ;;  %p889_p11 = por %p888_p12, %p887_p2 }
  0x26   : > { %p890_p6 = pnand %p889_p11, %p883_p0 }
  0x28   : > { %893 = shalt.err (!%p890_p6)
}
  0x29   : > { %s961_s21 = smov 128   ;;  %s962_s22 = smov 8  }
  0x2a   : > { %821 = dma.hbm_to_vmem [thread:$0]  (!%p1045_p13), %s1041_s25, 1024, %s1049_s27, %s1051_s29, %s961_s21, %s961_s21, %s962_s22  }
  0x2b   : > { %p740_p9 = scmp.ge.s32.totalorder %s958_s9, 1  ;;  %p106_p1 = scmp.lt.s32.totalorder %s958_s9, 3 }
  0x2d   : > { %p107_p3 = pnand %p740_p9, %p106_p1 }
  0x2e   : > { %s1075_s23 = sand.u32 (!%p107_p3), 1, %s950_s7   ;;  %p1207_p6 = scmp.ne.s32.totalorder (!%p107_p3), %s1203_s17, 0 }
  0x2f   : > { %110 = sbr.rel (%p107_p3) target bundleno = 730 (0x2da), region = 24  ;;  %s741_s24 = sshll.u32 (!%p107_p3), %s1075_s23, 6 }
  0x30   : > { %s113_s26 = scalar_lea.sflag (!%p107_p3), [#allocation3], %s1075_s23  ;;  %s1081_s30 = scalar_lea.vmem (!%p107_p3), [#allocation2], %s741_s24 }
  0x34   : > { %937 = dma.done.wait (%p1207_p6), %s113_s26, 1024  }
  0x35   : > { %939 = vsyncadd (%p1207_p6), %s113_s26, 4294966272  ;;  %v135_v0 = vlaneseq  ;;  %vm155_vm0 = vcmask 130048   ;;  %v963_v7 = vmov 1.0   ;;  %v147_v8 = vld [vmem:[%s1081_s30] sm:$0xff]  ;;  %v148_v9 = vld [vmem:[%s1081_s30 + $0x8] sm:$0xff]  ;;  %vm638_vm3 = vcmask 64512  }
  0x36   : > { %788 = vmatprep.mubr.msk.f32.mxu0 %vm155_vm0, %v147_v8  ;;  %v149_v10 = vld [vmem:[%s1081_s30 + $0x10] sm:$0xff]  ;;  %v154_v12 = vld [vmem:[%s1081_s30 + $0x38] sm:$0xff]  ;;  %v151_v14 = vld [vmem:[%s1081_s30 + $0x20] sm:$0xff]  ;;  %s134_s17 = scalar_lea.vmem [#allocation5], %s741_s24  ;;  %v964_v28 = vmov 0.0   ;;  %s767_s27 = sshll.u32 %s999_s10, 10 }
  0x37   : > { %v136_v1 = vshrl.u32 %v135_v0, 7  ;;  %v139_v2 = vand.u32 127, %v135_v0  ;;  %v153_v11 = vld [vmem:[%s1081_s30 + $0x30] sm:$0xff]  ;;  %v150_v13 = vld [vmem:[%s1081_s30 + $0x18] sm:$0xff]  ;;  %v152_v15 = vld [vmem:[%s1081_s30 + $0x28] sm:$0xff]  ;;  %639 = vst.msk [vmem:[%s134_s17] sm:$0xff] %vm638_vm3, %v964_v28  ;;  %s1153_s2 = scalar_lea.hbm %s1199_s1, %s767_s27 }
  0x38   : > { %797 = vmatprep.mubr.msk.f32.mxu1 %vm155_vm0, %v153_v11  ;;  %640 = vst.msk [vmem:[%s134_s17 + $0x8] sm:$0xff] %vm638_vm3, %v964_v28  ;;  %645 = vst.msk [vmem:[%s134_s17 + $0x30] sm:$0xff] %vm638_vm3, %v964_v28  ;;  %s661_s25 = sshll.u32 %s134_s17, 4  ;;  %s648_s3 = scalar_lea.sflag [#allocation4], %s1075_s23  ;;  %s1148_s25 = int_to_ptr.vmem [resolvable:$true] %s661_s25 }
  0x39   : > { %v137_v3 = vadd.s32 8, %v136_v1  ;;  %v140_v4 = vmul.u32 2, %v139_v2  ;;  %646 = vst.msk [vmem:[%s134_s17 + $0x38] sm:$0xff] %vm638_vm3, %v964_v28  ;;  %s894_s4 = scalar_lea.vmem %s1148_s25, 1024  ;;  %p1212_p12 = scmp.ne.s32.totalorder %s1204_s18, 0 }
  0x3a   : > { %p895_p11 = scmp.ne.s32.totalorder %s1148_s25, %s894_s4  ;;  %s965_s10 = smov [#allocation5]  }
  0x3b   : > { %vm1087_vm1 = vcmp.eq.s32.totalorder %v137_v3, %v140_v4  ;;  %vm1091_vm2 = vcmp.eq.s32.totalorder %v136_v1, %v140_v4  ;;  %s898_s5 = sshll.u32 %s965_s10, 4  ;;  %s899_s5 = int_to_ptr.vmem [resolvable:$false] %s898_s5 }
  0x3c   : > { %784 = vmatprep.subr.msk.mxu0 %vm1087_vm1, %v963_v7  ;;  %810 = vmatprep.subr.msk.mxu1 %vm1087_vm1, %v963_v7  ;;  %p896_p13 = pnand %p895_p11, %p1212_p12  ;;  %s900_s11 = scalar_lea.vmem %s899_s5, 2048 }
  0x3d   : > { %785 = vmatpush3.msk.msra.mxu0 %vm1087_vm1, %v963_v7  ;;  %812 = vmatpush3.msk.msra.mxu1 %vm1087_vm1, %v963_v7  ;;  %p901_p5 = scmp.lt.s32.totalorder %s1148_s25, %s899_s5  ;;  %p902_p7 = scmp.lt.s32.totalorder %s900_s11, %s894_s4 }
  0x3e   : > { %786 = vmatprep.subr.msk.mxu0 %vm1091_vm2, %v963_v7  ;;  %811 = vmatprep.subr.msk.mxu1 %vm1091_vm2, %v963_v7  ;;  %p897_p4 = pneg %p896_p13 }
  0x3f   : > { %787 = vmatpush3.msk.msra.mxu0 %vm1091_vm2, %v963_v7  ;;  %813 = vmatpush3.msk.msra.mxu1 %vm1091_vm2, %v963_v7  ;;  %p903_p8 = por %p902_p7, %p901_p5 }
  0x40   : > { %789 = vmatmul.mubr.msk.f32.vlgmr.msra.gmra.mxu0 %vm155_vm0, %v148_v9  ;;  %798 = vmatmul.mubr.msk.f32.vlgmr.msra.gmra.mxu1 %vm155_vm0, %v154_v12 }
  0x41   : > { %791 = vmatprep.mubr.msk.f32.mxu0 %vm155_vm0, %v149_v10  ;;  %800 = vmatprep.subr.msk.mxu1 %vm1087_vm1, %v963_v7  ;;  %p904_p10 = pnand %p903_p8, %p897_p4 }
  0x42   : > { %801 = vmatpush3.msk.msra.mxu1 %vm1087_vm1, %v963_v7 }
  0x43   : > { %802 = vmatprep.subr.msk.mxu1 %vm1091_vm2, %v963_v7 }
  0x44   : > { %792 = vmatmul.mubr.msk.f32.gmra.mxu0 %vm155_vm0, %v150_v13  ;;  %803 = vmatpush3.msk.msra.mxu1 %vm1091_vm2, %v963_v7 }
  0x45   : > { %794 = vmatprep.mubr.msk.f32.mxu0 %vm155_vm0, %v151_v14 }
  0x48   : > { %795 = vmatmul.mubr.msk.f32.gmra.mxu0 %vm155_vm0, %v152_v15 }
 0x100   : > { %v790_v16 = vpop.f32.mrf.mxu0  ;;  %v799_v22 = vpop.f32.mrf.mxu1 }
 0x102   : > { %v246_v17 = vpop.f32.mrf.mxu0  ;;  %v276_v23 = vpop.f32.mrf.mxu1 }
 0x103   : > { %285 = vxpose.xlu0.b32.start [1/2] (short) (narrow) %v246_v17, 8 }
 0x104   : > { %v793_v18 = vpop.f32.mrf.mxu0 }
 0x106   : > { %v256_v19 = vpop.f32.mrf.mxu0 }
 0x107   : > { %286 = vxpose.xlu0.b32.end [2/2] (short) (narrow) %v790_v16, 8  ;;  %317 = vxpose.xlu1.b32.start [1/2] (short) (narrow) %v256_v19, 8 }
 0x108   : > { %v796_v20 = vpop.f32.mrf.mxu0 }
 0x10a   : > { %v266_v21 = vpop.f32.mrf.mxu0 }
 0x10b   : > { %318 = vxpose.xlu1.b32.end [2/2] (short) (narrow) %v793_v18, 8  ;;  %349 = vxpose.xlu0.b32.start [1/2] (short) (narrow) %v266_v21, 8 }
 0x10f   : > { %381 = vxpose.xlu1.b32.start [1/2] (short) (narrow) %v276_v23, 8  ;;  %350 = vxpose.xlu0.b32.end [2/2] (short) (narrow) %v796_v20, 8 }
 0x113   : > { %382 = vxpose.xlu1.b32.end [2/2] (short) (narrow) %v799_v22, 8 }
 0x17f   : > { %v301_v24 = vpop.trf.xlu0 }
 0x180   : > { %804 = vmatprep.mubr.msk.f32.mxu1 %vm155_vm0, %v301_v24 }
 0x183   : > { %v333_v25 = vpop.trf.xlu1 }
 0x184   : > { %805 = vmatmul.mubr.msk.f32.vlgmr.msra.gmra.mxu1 %vm155_vm0, %v333_v25 }
 0x187   : > { %v365_v26 = vpop.trf.xlu0 }
 0x188   : > { %807 = vmatprep.mubr.msk.f32.mxu1 %vm155_vm0, %v365_v26 }
 0x18b   : > { %v397_v27 = vpop.trf.xlu1 }
 0x18c   : > { %808 = vmatmul.mubr.msk.f32.gmra.mxu1 %vm155_vm0, %v397_v27 }
 0x244   : > { %v806_v29 = vpop.f32.mrf.mxu1 }
 0x245   : > { %542 = vxpose.xlu1.b32.start.end [1/1] (short) (narrow) %v806_v29, 8 }
 0x246   : > { %v491_v30 = vpop.f32.mrf.mxu1 }
 0x247   : > { %510 = vxpose.xlu0.b32.start.end [1/1] (short) (narrow) %v491_v30, 8 }
 0x24c   : > { %v809_v31 = vpop.f32.mrf.mxu1 }
 0x24d   : > { %606 = vxpose.xlu1.b32.start.end [1/1] (short) (narrow) %v809_v31, 8 }
 0x24e   : > { %v501_v32 = vpop.f32.mrf.mxu1 }
 0x24f   : > { %574 = vxpose.xlu0.b32.start.end [1/1] (short) (narrow) %v501_v32, 8 }
 0x2c1   : > { %v558_v33 = vpop.trf.xlu1 }
 0x2c2   : > { %642 = vst.msk [vmem:[%s134_s17 + $0x18] sm:$0xff] %vm638_vm3, %v558_v33 }
 0x2c3   : > { %v526_v34 = vpop.trf.xlu0 }
 0x2c4   : > { %641 = vst.msk [vmem:[%s134_s17 + $0x10] sm:$0xff] %vm638_vm3, %v526_v34 }
 0x2c9   : > { %v622_v35 = vpop.trf.xlu1 }
 0x2ca   : > { %644 = vst.msk [vmem:[%s134_s17 + $0x28] sm:$0xff] %vm638_vm3, %v622_v35 }
 0x2cb   : > { %v590_v36 = vpop.trf.xlu0 }
 0x2cc   : > { %643 = vst.msk [vmem:[%s134_s17 + $0x20] sm:$0xff] %vm638_vm3, %v590_v36 }
 0x2cd   : > { %907 = shalt.err (!%p904_p10)
}
 0x2ce   : > { %s908_s13 = scalar_lea.hbm %s1153_s2, 1024  ;;  %s912_s20 = scalar_lea.hbm %s1199_s1, 2048 }
 0x2cf   : > { %p909_p0 = scmp.ne.s32.totalorder %s1153_s2, %s908_s13  ;;  %p913_p1 = scmp.lt.s32.totalorder %s1153_s2, %s1199_s1 }
 0x2d0   : > { %p914_p3 = scmp.lt.s32.totalorder %s912_s20, %s908_s13 }
 0x2d1   : > { %p910_p2 = pnand %p909_p0, %p1212_p12 }
 0x2d2   : > { %p915_p6 = por %p914_p3, %p913_p1 }
 0x2d3   : > { %p911_p9 = pneg %p910_p2 }
 0x2d5   : > { %p916_p11 = pnand %p915_p6, %p911_p9 }
 0x2d7   : > { %919 = shalt.err (!%p916_p11)
}
 0x2d8   : > { %s966_s24 = smov 128   ;;  %s967_s26 = smov 8  }
 0x2d9   : > { %816 = dma.vmem_to_hbm [thread:$0]  (%p1212_p12), %s1148_s25, 1024, %s1153_s2, %s648_s3, %s966_s24, %s966_s24, %s967_s26  }
 0x2da PF: > { %s676_s30 = sand.u32 1, %s946_s6   ;;  %p1213_p13 = scmp.ne.s32.totalorder %s1205_s19, 0 }
 0x2db   : > { %p1214_p4 = scmp.ge.s32.totalorder %s958_s9, 2  ;;  %s677_s17 = scalar_lea.sflag [#allocation4], %s676_s30 }
 0x2dd   : > { %p823_p5 = pnand %p1214_p4, %p1213_p13 }
 0x2df   : > { %p824_p7 = pneg %p823_p5 }
 0x2e1   : > { %941 = dma.done.wait (%p824_p7), %s677_s17, 1024  }
 0x2e2   : > { %943 = vsyncadd (%p824_p7), %s677_s17, 4294966272  ;;  %p14_p8 = scmp.ge.s32.totalorder %s1003_s12, 4   ;;  %s1215_s6 = smov %s950_s7 }
 0x2e3   : > { %s1216_s7 = smov %s954_s8  ;;  %s1217_s8 = smov %s1015_s15 }
 0x2e4   : > { %s1218_s9 = smov %s1003_s12  ;;  %16 = sbr.rel (!%p14_p8) target bundleno = 5 (0x5), region = 69 }
 0x2e9   :  { %682 = vsyncpa [#allocation3], 1 }
 0x2ea   :  { %684 = vsyncpa [#allocation3 + $0x1], 1 }
 0x2eb   :  { %685 = vsyncpa [#allocation4], 1 }
 0x2ec   :  { %687 = vsyncpa [#allocation4 + $0x1], 1 }

</bundles_post_ra>
